<compile_context>
chip_gen: v5e
topology: v5e:2x2
jax: 0.10.0
libtpu: 0.0.40
codegen_flags: <defaults>
</compile_context>

<pallas_src>
import jax
import jax.numpy as jnp
from jax.experimental import pallas as pl
from jax.experimental.pallas import tpu as pltpu

HIDDEN = 64
LEAKY_SLOPE = 0.01
LANE = 128
_F32 = 4


def _leaky_relu(x):
    return jnp.where(x > 0, x, LEAKY_SLOPE * x)


def _round_up(a, b):
    return (a + b - 1) // b * b


# --------------------------------------------------------------------------- #
# Kernel
# --------------------------------------------------------------------------- #
def reward_kernel(x_ref, w1_ref, b1_ref, w2_ref, b2_ref, o_ref):
    # x_ref : (tm, D)    batch tile (f32 or bf16)
    # w1_ref: (D, Hp)    layer-1 weight (same dtype as x), hidden padded to 128
    # b1_ref: (1, Hp)    layer-1 bias, f32
    # w2_ref: (Hp, 1)    layer-2 weight column, f32 (zero rows in the padding)
    # b2_ref: (1, 1)     layer-2 bias, f32 scalar in SMEM
    # o_ref : (tm, 1)    output tile
    h = jnp.dot(x_ref[...], w1_ref[...], preferred_element_type=jnp.float32)
    h = _leaky_relu(h + b1_ref[...])                                  # (tm, Hp)
    y = jnp.dot(h, w2_ref[...], preferred_element_type=jnp.float32)  # (tm, 1)
    y = _leaky_relu(y + b2_ref[0, 0])
    o_ref[...] = y.astype(o_ref.dtype)


# --------------------------------------------------------------------------- #
# One-time parameter preparation (hoisted out of the hot path)
# --------------------------------------------------------------------------- #
def prepare_params(w1, b1, w2, b2, *, x_dtype=jnp.float32):
    """Pad hidden 64 -> 128 once (zero-padded units contribute exactly 0) and
    store W1 in the dtype x will arrive in.  Call once at init time."""
    D, H = w1.shape
    Hp = _round_up(H, LANE)
    w1p = jnp.pad(jnp.asarray(w1, jnp.float32), ((0, 0), (0, Hp - H))).astype(x_dtype)
    b1p = jnp.pad(jnp.asarray(b1, jnp.float32).reshape(1, H), ((0, 0), (0, Hp - H)))
    w2p = jnp.pad(jnp.asarray(w2, jnp.float32).reshape(H, 1), ((0, Hp - H), (0, 0)))
    b2p = jnp.asarray(b2, jnp.float32).reshape(1, 1)
    return w1p, b1p, w2p, b2p


# --------------------------------------------------------------------------- #
# Tile selection: HBM byte target per step, capped by an explicit VMEM budget
# --------------------------------------------------------------------------- #
def _select_tile(B, D, x_itemsize, *, target_x_bytes, vmem_budget):
    lane_d = _round_up(D, LANE)
    # Per-row VMEM cost: double-buffered lane-padded x tile, f32 intermediates
    # (h, activated h, y), double-buffered lane-padded (tm, 1) output tile.
    per_row = 2 * lane_d * x_itemsize + 3 * LANE * _F32 + 2 * LANE * _F32
    # Tile-independent residents: double-buffered W1 + b1/w2/b2 + slack.
    fixed = 2 * _round_up(D, 8) * LANE * x_itemsize + (256 << 10)
    cap = max(LANE, (max(vmem_budget - fixed, 0) // per_row) // LANE * LANE)
    # Rows needed to hit the per-step HBM byte target for x.
    want = _round_up(max(target_x_bytes // max(D * x_itemsize, 1), 1), LANE)
    tm = max(LANE, min(want, cap, _round_up(B, LANE)))
    needed = fixed + tm * per_row
    return tm, needed


# --------------------------------------------------------------------------- #
# Wrapper
# --------------------------------------------------------------------------- #
def reward_forward(x, params, *, target_x_bytes=2 << 20, vmem_budget=32 << 20):
    """Fused forward pass.  x: [B, D] (f32 or bf16) -> [B, 1] float32."""
    w1p, b1p, w2p, b2p = params
    B, D = x.shape
    Hp = w1p.shape[1]
    assert w1p.shape[0] == D, "prepare_params input_dim must match x"
    if w1p.dtype != x.dtype:
        # Tiny resident array; prefer preparing params with x_dtype up front.
        w1p = w1p.astype(x.dtype)

    tm, needed = _select_tile(
        B, D, x.dtype.itemsize,
        target_x_bytes=target_x_bytes, vmem_budget=vmem_budget)
    n_tiles = pl.cdiv(B, tm)
    # >= 40 MiB loosens the v5e/v6e scoped-VMEM defaults while staying under
    # v7x's 64 MiB physical VMEM for any reasonable D.
    vmem_limit = int(max(40 << 20, min(needed + (8 << 20), 100 << 20)))

    out = pl.pallas_call(
        reward_kernel,
        out_shape=jax.ShapeDtypeStruct((n_tiles * tm, 1), jnp.float32),
        grid_spec=pltpu.PrefetchScalarGridSpec(
            num_scalar_prefetch=0,
            grid=(n_tiles,),
            in_specs=[
                pl.BlockSpec((tm, D), lambda i: (i, 0)),            # x (streamed)
                pl.BlockSpec((D, Hp), lambda i: (0, 0)),            # W1 (resident)
                pl.BlockSpec((1, Hp), lambda i: (0, 0)),            # b1
                pl.BlockSpec((Hp, 1), lambda i: (0, 0)),            # W2 column
                pl.BlockSpec(memory_space=pltpu.MemorySpace.SMEM),  # b2 scalar
            ],
            out_specs=pl.BlockSpec((tm, 1), lambda i: (i, 0)),
        ),
        compiler_params=pltpu.CompilerParams(
            dimension_semantics=("parallel",),   # shard batch grid across TCs
            vmem_limit_bytes=vmem_limit,
        ),
    )(x, w1p, b1p, w2p, b2p)

    # Rows beyond B in the partial last tile are garbage (row-independent) and
    # are discarded here.  Keep this invariant if cross-row ops are ever added.
    return out[:B]


# --------------------------------------------------------------------------- #
# Init + pure-JAX reference
# --------------------------------------------------------------------------- #
def init_params(key, input_dim):
    """Mimics torch.nn.Linear init: U(-1/sqrt(fan_in), +1/sqrt(fan_in))."""
    k1, k2, k3, k4 = jax.random.split(key, 4)
    bound1 = 1.0 / jnp.sqrt(jnp.float32(input_dim))
    bound2 = 1.0 / jnp.sqrt(jnp.float32(HIDDEN))
    w1 = jax.random.uniform(k1, (input_dim, HIDDEN), jnp.float32, -bound1, bound1)
    b1 = jax.random.uniform(k2, (HIDDEN,), jnp.float32, -bound1, bound1)
    w2 = jax.random.uniform(k3, (HIDDEN, 1), jnp.float32, -bound2, bound2)
    b2 = jax.random.uniform(k4, (1,), jnp.float32, -bound2, bound2)
    return w1, b1, w2, b2


def reference_forward(x, w1, b1, w2, b2):
    h = _leaky_relu(x @ w1 + b1)
    return _leaky_relu(h @ w2 + b2)


if __name__ == "__main__":
    key = jax.random.PRNGKey(0)
    kx, kp = jax.random.split(key)

    batch, input_dim = 8, 32
    x = jax.random.normal(kx, (batch, input_dim), jnp.float32)
    w1, b1, w2, b2 = init_params(kp, input_dim)
    params_f32 = prepare_params(w1, b1, w2, b2, x_dtype=jnp.float32)

    # f32 path (semantics of the original module)
    out = jax.block_until_ready(reward_forward(x, params_f32))
    ref = reference_forward(x, w1, b1, w2, b2)
    assert out.shape == (batch, 1)
    assert jnp.allclose(out, ref, atol=1e-4, rtol=1e-4), "f32 mismatch vs reference"

    # Non-tile-multiple batch with a multi-tile grid: exercises the partial
    # last input block (no wrapper-side jnp.pad) and the [:B] slice.
    x2 = jax.random.normal(jax.random.fold_in(kx, 1), (1000, input_dim), jnp.float32)
    out2 = jax.block_until_ready(
        reward_forward(x2, params_f32, target_x_bytes=64 << 10))  # force >1 tile
    ref2 = reference_forward(x2, w1, b1, w2, b2)
    assert out2.shape == (1000, 1)
    assert jnp.allclose(out2, ref2, atol=1e-4, rtol=1e-4), "partial-block mismatch"

    # bf16-x fast path: x arrives bf16 from the producer (no wrapper cast);
    # only W1 is stored bf16, accumulation stays f32.
    x_bf = x.astype(jnp.bfloat16)
    params_bf = prepare_params(w1, b1, w2, b2, x_dtype=jnp.bfloat16)
    out3 = jax.block_until_ready(reward_forward(x_bf, params_bf))
    assert jnp.allclose(out3, ref, atol=5e-2, rtol=5e-2), "bf16 path mismatch"

    # TODO(synk): compute_proba / train_step (Adam optimizer, BCE loss,
    # autograd) are host-side training-loop logic, not part of the forward
    # hot path, and are not translated to Pallas.

    print("KERNEL_OK")
</pallas_src>

<mosaic_0001>
module attributes {stable_mosaic.version = 11 : i64} {
  func.func @reward_kernel(%arg0: i32, %arg1: memref<128x32xf32, #tpu.memory_space<vmem>>, %arg2: memref<32x128xf32, #tpu.memory_space<vmem>>, %arg3: memref<1x128xf32, #tpu.memory_space<vmem>>, %arg4: memref<128x1xf32, #tpu.memory_space<vmem>>, %arg5: memref<1x1xf32, #tpu.memory_space<smem>>, %arg6: memref<128x1xf32, #tpu.memory_space<vmem>>) attributes {dimension_semantics = [#tpu.dimension_semantics<parallel>], iteration_bounds = array<i64: 1>, scalar_prefetch = 0 : i64, scratch_operands = 0 : i64, tpu.core_type = #tpu.core_type<tc>, window_params = [{transform_indices = @transform_0, window_bounds = array<i64: 128, 32>}, {pipeline_mode = #tpu.pipeline_mode<synchronous>, transform_indices = @transform_1, window_bounds = array<i64: 32, 128>}, {pipeline_mode = #tpu.pipeline_mode<synchronous>, transform_indices = @transform_2, window_bounds = array<i64: 1, 128>}, {pipeline_mode = #tpu.pipeline_mode<synchronous>, transform_indices = @transform_3, window_bounds = array<i64: 128, 1>}, {transform_indices = @transform_4, window_bounds = array<i64: 1, 1>}, {transform_indices = @transform_5, window_bounds = array<i64: 128, 1>}]} {
    %c0 = arith.constant 0 : index
    %c0_0 = arith.constant 0 : index
    %0 = vector.load %arg1[%c0, %c0_0] : memref<128x32xf32, #tpu.memory_space<vmem>>, vector<128x32xf32>
    %c0_1 = arith.constant 0 : index
    %c0_2 = arith.constant 0 : index
    %1 = vector.load %arg2[%c0_1, %c0_2] : memref<32x128xf32, #tpu.memory_space<vmem>>, vector<32x128xf32>
    %cst = arith.constant dense<0.000000e+00> : vector<128x128xf32>
    %2 = tpu.matmul %0, %1, %cst {dimension_numbers = #tpu.dot_dimension_numbers<[1], [0], [0], [1], [0, 0, 1, 1], [], []>} : vector<128x32xf32>, vector<32x128xf32>, vector<128x128xf32> -> vector<128x128xf32>
    %c0_3 = arith.constant 0 : index
    %c0_4 = arith.constant 0 : index
    %3 = vector.load %arg3[%c0_3, %c0_4] : memref<1x128xf32, #tpu.memory_space<vmem>>, vector<1x128xf32>
    %4 = vector.broadcast %3 : vector<1x128xf32> to vector<128x128xf32>
    %5 = arith.addf %2, %4 : vector<128x128xf32>
    %cst_5 = arith.constant 0.000000e+00 : f32
    %6 = vector.broadcast %cst_5 : f32 to vector<128x128xf32>
    %7 = arith.cmpf ogt, %5, %6 : vector<128x128xf32>
    %cst_6 = arith.constant 0.00999999977 : f32
    %8 = vector.broadcast %cst_6 : f32 to vector<128x128xf32>
    %9 = arith.mulf %8, %5 : vector<128x128xf32>
    %10 = arith.select %7, %5, %9 : vector<128x128xi1>, vector<128x128xf32>
    %c0_7 = arith.constant 0 : index
    %c0_8 = arith.constant 0 : index
    %11 = vector.load %arg4[%c0_7, %c0_8] : memref<128x1xf32, #tpu.memory_space<vmem>>, vector<128x1xf32>
    %cst_9 = arith.constant dense<0.000000e+00> : vector<128x1xf32>
    %12 = tpu.matmul %10, %11, %cst_9 {dimension_numbers = #tpu.dot_dimension_numbers<[1], [0], [0], [1], [0, 0, 1, 1], [], []>} : vector<128x128xf32>, vector<128x1xf32>, vector<128x1xf32> -> vector<128x1xf32>
    %c0_10 = arith.constant 0 : index
    %c0_11 = arith.constant 0 : index
    %13 = memref.load %arg5[%c0_10, %c0_11] : memref<1x1xf32, #tpu.memory_space<smem>>
    %14 = vector.broadcast %13 : f32 to vector<128x1xf32>
    %15 = arith.addf %12, %14 : vector<128x1xf32>
    %cst_12 = arith.constant 0.000000e+00 : f32
    %16 = vector.broadcast %cst_12 : f32 to vector<128x1xf32>
    %17 = arith.cmpf ogt, %15, %16 : vector<128x1xf32>
    %cst_13 = arith.constant 0.00999999977 : f32
    %18 = vector.broadcast %cst_13 : f32 to vector<128x1xf32>
    %19 = arith.mulf %18, %15 : vector<128x1xf32>
    %20 = arith.select %17, %15, %19 : vector<128x1xi1>, vector<128x1xf32>
    %c0_14 = arith.constant 0 : index
    %c0_15 = arith.constant 0 : index
    %21 = vector.load %arg6[%c0_14, %c0_15] : memref<128x1xf32, #tpu.memory_space<vmem>>, vector<128x1xf32>
    tpu.vector_store %arg6[%c0_14, %c0_15], %20 {strides = array<i32>} : memref<128x1xf32, #tpu.memory_space<vmem>>, vector<128x1xf32>,
    return
  }
  func.func @transform_0(%arg0: i32) -> (i32, i32) {
    %c0_i32 = arith.constant 0 : i32
    %c0_i32_0 = arith.constant 0 : i32
    return %arg0, %c0_i32 : i32, i32
  }
  func.func @transform_1(%arg0: i32) -> (i32, i32) {
    %c0_i32 = arith.constant 0 : i32
    %c0_i32_0 = arith.constant 0 : i32
    %c0_i32_1 = arith.constant 0 : i32
    return %c0_i32, %c0_i32_0 : i32, i32
  }
  func.func @transform_2(%arg0: i32) -> (i32, i32) {
    %c0_i32 = arith.constant 0 : i32
    %c0_i32_0 = arith.constant 0 : i32
    %c0_i32_1 = arith.constant 0 : i32
    return %c0_i32, %c0_i32_0 : i32, i32
  }
  func.func @transform_3(%arg0: i32) -> (i32, i32) {
    %c0_i32 = arith.constant 0 : i32
    %c0_i32_0 = arith.constant 0 : i32
    %c0_i32_1 = arith.constant 0 : i32
    return %c0_i32, %c0_i32_0 : i32, i32
  }
  func.func @transform_4(%arg0: i32) -> (i32, i32) {
    %c0_i32 = arith.constant 0 : i32
    %c0_i32_0 = arith.constant 0 : i32
    %c0_i32_1 = arith.constant 0 : i32
    return %c0_i32, %c0_i32_0 : i32, i32
  }
  func.func @transform_5(%arg0: i32) -> (i32, i32) {
    %c0_i32 = arith.constant 0 : i32
    %c0_i32_0 = arith.constant 0 : i32
    return %arg0, %c0_i32 : i32, i32
  }
}

</mosaic_0001>

<bundles_post_ra>
// kernel: tpu_custom_call.1
= control target key start
LH: loop header
LB: loop body
LE: loop exit
PB: predicated region body
PF: predicated region fallthrough
CT: control target
= control target key end

     0   :  { %vm45_vm0 = vcmask 261120   ;;  %s672_s1 = inlined_call_operand.vmem [shape: f32[32,128], index: 1, kind: input, shape index: {}]   ;;  %s673_s0 = inlined_call_operand.vmem [shape: f32[8,32], index: 0, kind: input, shape index: {}]   ;;  %s674_s2 = inlined_call_operand.vmem [shape: f32[1,128], index: 2, kind: input, shape index: {}]   ;;  %s675_s3 = inlined_call_operand.vmem [shape: f32[128,1], index: 3, kind: input, shape index: {}]   ;;  %s676_s4 = inlined_call_operand.<no memory space> [shape: f32[1,1], index: 4, kind: input, shape index: {}]   ;;  %s677_s5 = inlined_call_operand.vmem [shape: f32[128,1], index: 5, kind: output, shape index: {}]  }
   0x1   :  { %v40_v0 = vld [vmem:[%s672_s1 + $0x18] sm:$0xff]  ;;  %v39_v1 = vld [vmem:[%s672_s1 + $0x10] sm:$0xff]  ;;  %v38_v2 = vld [vmem:[%s672_s1 + $0x8] sm:$0xff] }
   0x2   :  { %106 = vmatpush.msra.mxu0 %v40_v0  ;;  %375 = vmatpush.msra.mxu3 %v40_v0  ;;  %v37_v3 = vld [vmem:[%s672_s1] sm:$0xff]  ;;  %v22_v5 = vld [vmem:[%s673_s0 + $0x8] sm:$0xff]  ;;  %v23_v6 = vld [vmem:[%s673_s0 + $0x10] sm:$0xff] }
   0x3   :  { %v21_v4 = vld [vmem:[%s673_s0] sm:$0xff]  ;;  %v31_v7 = vld [vmem:[%s673_s0 + $0x50] sm:$0xff]  ;;  %v24_v8 = vld [vmem:[%s673_s0 + $0x18] sm:$0xff] }
   0x4   :  { %107 = vmatpush.msra.mxu0 %v39_v1  ;;  %376 = vmatpush.msra.mxu3 %v39_v1  ;;  %v32_v9 = vld [vmem:[%s673_s0 + $0x58] sm:$0xff]  ;;  %v25_v10 = vld [vmem:[%s673_s0 + $0x20] sm:$0xff]  ;;  %v26_v12 = vld [vmem:[%s673_s0 + $0x28] sm:$0xff] }
   0x5   :  { %v33_v11 = vld [vmem:[%s673_s0 + $0x60] sm:$0xff]  ;;  %v34_v13 = vld [vmem:[%s673_s0 + $0x68] sm:$0xff]  ;;  %v222_v14 = vld [vmem:[%s675_s3 + $0x78] sm:$0xff] }
   0x6   :  { %108 = vmatpush.msra.mxu0 %v38_v2  ;;  %377 = vmatpush.msra.mxu3 %v38_v2  ;;  %v221_v15 = vld [vmem:[%s675_s3 + $0x70] sm:$0xff]  ;;  %v220_v16 = vld [vmem:[%s675_s3 + $0x68] sm:$0xff]  ;;  %v219_v18 = vld [vmem:[%s675_s3 + $0x60] sm:$0xff] }
   0x7   :  { %225 = vmatpush.msra.mxu1 %v222_v14  ;;  %379 = vmatpush.msra.mxu2 %v222_v14  ;;  %v27_v17 = vld [vmem:[%s673_s0 + $0x30] sm:$0xff]  ;;  %v218_v20 = vld [vmem:[%s675_s3 + $0x58] sm:$0xff]  ;;  %v216_v22 = vld [vmem:[%s675_s3 + $0x48] sm:$0xff] }
   0x8   :  { %109 = vmatpush.msra.mxu0 %v37_v3  ;;  %378 = vmatpush.msra.mxu3 %v37_v3  ;;  %v35_v19 = vld [vmem:[%s673_s0 + $0x70] sm:$0xff]  ;;  %v28_v23 = vld [vmem:[%s673_s0 + $0x38] sm:$0xff]  ;;  %v215_v24 = vld [vmem:[%s675_s3 + $0x40] sm:$0xff] }
   0x9   :  { %359 = vmatmul.msk.f32.vlgmr.msra.gmra.mxu0 %vm45_vm0, %v21_v4  ;;  %369 = vmatmul.msk.f32.vlgmr.msra.gmra.mxu3 %vm45_vm0, %v31_v7  ;;  %v217_v21 = vld [vmem:[%s675_s3 + $0x50] sm:$0xff]  ;;  %v36_v25 = vld [vmem:[%s673_s0 + $0x78] sm:$0xff]  ;;  %v212_v28 = vld [vmem:[%s675_s3 + $0x28] sm:$0xff] }
   0xa   :  { %380 = vmatpush.msrb.mxu3 %v222_v14  ;;  %226 = vmatpush.msra.mxu1 %v221_v15  ;;  %v214_v26 = vld [vmem:[%s675_s3 + $0x38] sm:$0xff]  ;;  %v213_v27 = vld [vmem:[%s675_s3 + $0x30] sm:$0xff]  ;;  %v29_v29 = vld [vmem:[%s673_s0 + $0x40] sm:$0xff] }
   0xb   :  { %381 = vmatpush.msra.mxu2 %v221_v15  ;;  %v211_v30 = vld [vmem:[%s675_s3 + $0x20] sm:$0xff]  ;;  %v210_v31 = vld [vmem:[%s675_s3 + $0x18] sm:$0xff]  ;;  %v30_v32 = vld [vmem:[%s673_s0 + $0x48] sm:$0xff] }
   0xc   :  { %382 = vmatpush.msrb.mxu3 %v221_v15  ;;  %227 = vmatpush.msra.mxu1 %v220_v16  ;;  %v209_v33 = vld [vmem:[%s675_s3 + $0x10] sm:$0xff]  ;;  %v208_v34 = vld [vmem:[%s675_s3 + $0x8] sm:$0xff]  ;;  %v207_v35 = vld [vmem:[%s675_s3] sm:$0xff] }
   0xd   :  { %383 = vmatpush.msra.mxu2 %v220_v16  ;;  %v569_v36 = vld [vmem:[%s674_s2] ss:$0 sm:$0xff] }
   0xe   :  { %384 = vmatpush.msrb.mxu3 %v220_v16  ;;  %228 = vmatpush.msra.mxu1 %v219_v18 }
   0xf   :  { %385 = vmatpush.msra.mxu2 %v219_v18 }
  0x10   :  { %229 = vmatpush.msra.mxu1 %v218_v20  ;;  %386 = vmatpush.msrb.mxu3 %v219_v18 }
  0x11   :  { %360 = vmatmul.msk.f32.gmra.mxu0 %vm45_vm0, %v22_v5  ;;  %370 = vmatmul.msk.f32.gmra.mxu3 %vm45_vm0, %v32_v9 }
  0x12   :  { %387 = vmatpush.msra.mxu2 %v218_v20  ;;  %230 = vmatpush.msra.mxu1 %v217_v21 }
  0x13   :  { %388 = vmatpush.msrb.mxu3 %v218_v20 }
  0x14   :  { %389 = vmatpush.msra.mxu2 %v217_v21  ;;  %231 = vmatpush.msra.mxu1 %v216_v22 }
  0x15   :  { %390 = vmatpush.msrb.mxu3 %v217_v21 }
  0x16   :  { %391 = vmatpush.msra.mxu2 %v216_v22  ;;  %232 = vmatpush.msra.mxu1 %v215_v24 }
  0x17   :  { %392 = vmatpush.msrb.mxu3 %v216_v22 }
  0x18   :  { %393 = vmatpush.msra.mxu2 %v215_v24  ;;  %233 = vmatpush.msra.mxu1 %v214_v26 }
  0x19   :  { %361 = vmatmul.msk.f32.gmra.mxu0 %vm45_vm0, %v23_v6  ;;  %371 = vmatmul.msk.f32.gmra.mxu3 %vm45_vm0, %v33_v11 }
  0x1a   :  { %395 = vmatpush.msra.mxu2 %v214_v26  ;;  %234 = vmatpush.msra.mxu1 %v213_v27 }
  0x1b   :  { %394 = vmatpush.msrb.mxu3 %v215_v24 }
  0x1c   :  { %397 = vmatpush.msra.mxu2 %v213_v27  ;;  %235 = vmatpush.msra.mxu1 %v212_v28 }
  0x1d   :  { %396 = vmatpush.msrb.mxu3 %v214_v26 }
  0x1e   :  { %399 = vmatpush.msra.mxu2 %v212_v28  ;;  %236 = vmatpush.msra.mxu1 %v211_v30 }
  0x1f   :  { %398 = vmatpush.msrb.mxu3 %v213_v27 }
  0x20   :  { %401 = vmatpush.msra.mxu2 %v211_v30  ;;  %237 = vmatpush.msra.mxu1 %v210_v31 }
  0x21   :  { %362 = vmatmul.msk.f32.gmra.mxu0 %vm45_vm0, %v24_v8  ;;  %372 = vmatmul.msk.f32.gmra.mxu3 %vm45_vm0, %v34_v13 }
  0x22   :  { %403 = vmatpush.msra.mxu2 %v210_v31  ;;  %400 = vmatpush.msrb.mxu3 %v212_v28 }
  0x23   :  { %238 = vmatpush.msra.mxu1 %v209_v33 }
  0x24   :  { %402 = vmatpush.msrb.mxu3 %v211_v30  ;;  %405 = vmatpush.msra.mxu2 %v209_v33 }
  0x25   :  { %239 = vmatpush.msra.mxu1 %v208_v34 }
  0x26   :  { %404 = vmatpush.msrb.mxu3 %v210_v31  ;;  %407 = vmatpush.msra.mxu2 %v208_v34 }
  0x27   :  { %240 = vmatpush.msra.mxu1 %v207_v35 }
  0x28   :  { %406 = vmatpush.msrb.mxu3 %v209_v33  ;;  %409 = vmatpush.msra.mxu2 %v207_v35 }
  0x29   :  { %363 = vmatmul.msk.f32.gmra.mxu0 %vm45_vm0, %v25_v10  ;;  %373 = vmatmul.msk.f32.gmra.mxu3 %vm45_vm0, %v35_v19 }
  0x2a   :  { %408 = vmatpush.msrb.mxu3 %v208_v34 }
  0x2c   :  { %410 = vmatpush.msrb.mxu3 %v207_v35 }
  0x31   :  { %364 = vmatmul.msk.f32.gmra.mxu0 %vm45_vm0, %v26_v12  ;;  %374 = vmatmul.msk.f32.gmra.mxu3 %vm45_vm0, %v36_v25 }
  0x39   :  { %365 = vmatmul.msk.f32.gmra.mxu0 %vm45_vm0, %v27_v17 }
  0x41   :  { %366 = vmatmul.msk.f32.gmra.mxu0 %vm45_vm0, %v28_v23 }
  0x49   :  { %367 = vmatmul.msk.f32.gmra.mxu0 %vm45_vm0, %v29_v29 }
  0x51   :  { %368 = vmatmul.msk.f32.gmra.mxu0 %vm45_vm0, %v30_v32 }
  0x86   :  { %v111_v37 = vpop.f32.mrf.mxu0 }
  0x87   :  { %v112_v38 = vadd.f32 %v569_v36, %v111_v37 }
  0x89   :  { %vm159_vm1 = vcmp.gt.f32.partialorder %v112_v38, 0.0  ;;  %v175_v39 = vmul.f32 0.01, %v112_v38 }
  0x8b   :  { %v191_v40 = vsel %vm159_vm1, %v112_v38, %v175_v39  ;;  %v590_v38 = vstv %s676_s4 }
  0x8c   :  { %241 = vmatmul.f32.vlgmr.msra.gmra.mxu1 %v191_v40  ;;  %v141_v51 = vpop.f32.mrf.mxu3 }
  0x8d   :  { %v142_v24 = vadd.f32 %v569_v36, %v141_v51 }
  0x8e   :  { %v114_v41 = vpop.f32.mrf.mxu0 }
  0x8f   :  { %v115_v42 = vadd.f32 %v569_v36, %v114_v41  ;;  %v185_v26 = vmul.f32 0.01, %v142_v24  ;;  %vm169_vm13 = vcmp.gt.f32.partialorder %v142_v24, 0.0 }
  0x91   :  { %vm160_vm2 = vcmp.gt.f32.partialorder %v115_v42, 0.0  ;;  %v176_v43 = vmul.f32 0.01, %v115_v42  ;;  %v201_v28 = vsel %vm169_vm13, %v142_v24, %v185_v26 }
  0x93   :  { %v192_v44 = vsel %vm160_vm2, %v115_v42, %v176_v43  ;;  %vm338_vm2 = vcmask 7168  }
  0x94   :  { %244 = vmatmul.f32.gmra.mxu1 %v192_v44  ;;  %v144_v56 = vpop.f32.mrf.mxu3 }
  0x95   :  { %v145_v27 = vadd.f32 %v569_v36, %v144_v56 }
  0x96   :  { %v117_v45 = vpop.f32.mrf.mxu0 }
  0x97   :  { %v118_v46 = vadd.f32 %v569_v36, %v117_v45  ;;  %v186_v29 = vmul.f32 0.01, %v145_v27  ;;  %vm170_vm14 = vcmp.gt.f32.partialorder %v145_v27, 0.0 }
  0x99   :  { %vm161_vm3 = vcmp.gt.f32.partialorder %v118_v46, 0.0  ;;  %v177_v47 = vmul.f32 0.01, %v118_v46  ;;  %v202_v31 = vsel %vm170_vm14, %v145_v27, %v186_v29 }
  0x9b   :  { %v193_v48 = vsel %vm161_vm3, %v118_v46, %v177_v47 }
  0x9c   :  { %247 = vmatmul.f32.gmra.mxu1 %v193_v48  ;;  %v147_v61 = vpop.f32.mrf.mxu3 }
  0x9d   :  { %v148_v30 = vadd.f32 %v569_v36, %v147_v61 }
  0x9e   :  { %v120_v49 = vpop.f32.mrf.mxu0 }
  0x9f   :  { %v121_v50 = vadd.f32 %v569_v36, %v120_v49  ;;  %v187_v32 = vmul.f32 0.01, %v148_v30  ;;  %vm171_vm15 = vcmp.gt.f32.partialorder %v148_v30, 0.0 }
  0xa1   :  { %vm162_vm4 = vcmp.gt.f32.partialorder %v121_v50, 0.0  ;;  %v178_v52 = vmul.f32 0.01, %v121_v50  ;;  %v203_v34 = vsel %vm171_vm15, %v148_v30, %v187_v32 }
  0xa3   :  { %v194_v53 = vsel %vm162_vm4, %v121_v50, %v178_v52 }
  0xa4   :  { %250 = vmatmul.f32.gmra.mxu1 %v194_v53  ;;  %v150_v2 = vpop.f32.mrf.mxu3 }
  0xa5   :  { %v151_v33 = vadd.f32 %v569_v36, %v150_v2 }
  0xa6   :  { %v123_v54 = vpop.f32.mrf.mxu0 }
  0xa7   :  { %v124_v55 = vadd.f32 %v569_v36, %v123_v54  ;;  %v188_v35 = vmul.f32 0.01, %v151_v33  ;;  %vm172_vm0 = vcmp.gt.f32.partialorder %v151_v33, 0.0 }
  0xa9   :  { %vm163_vm5 = vcmp.gt.f32.partialorder %v124_v55, 0.0  ;;  %v179_v57 = vmul.f32 0.01, %v124_v55  ;;  %v204_v37 = vsel %vm172_vm0, %v151_v33, %v188_v35 }
  0xab   :  { %v195_v58 = vsel %vm163_vm5, %v124_v55, %v179_v57 }
  0xac   :  { %253 = vmatmul.f32.gmra.mxu1 %v195_v58  ;;  %v153_v7 = vpop.f32.mrf.mxu3 }
  0xad   :  { %v154_v8 = vadd.f32 %v569_v36, %v153_v7 }
  0xae   :  { %v126_v59 = vpop.f32.mrf.mxu0 }
  0xaf   :  { %v127_v60 = vadd.f32 %v569_v36, %v126_v59  ;;  %v189_v10 = vmul.f32 0.01, %v154_v8  ;;  %vm173_vm9 = vcmp.gt.f32.partialorder %v154_v8, 0.0 }
  0xb1   :  { %vm164_vm6 = vcmp.gt.f32.partialorder %v127_v60, 0.0  ;;  %v180_v62 = vmul.f32 0.01, %v127_v60  ;;  %v205_v12 = vsel %vm173_vm9, %v154_v8, %v189_v10 }
  0xb2   :  { %283 = vmatmul.f32.vlgmr.msrb.gmra.mxu3 %v205_v12 }
  0xb3   :  { %v196_v63 = vsel %vm164_vm6, %v127_v60, %v180_v62 }
  0xb4   :  { %256 = vmatmul.f32.gmra.mxu1 %v196_v63  ;;  %v156_v15 = vpop.f32.mrf.mxu3 }
  0xb5   :  { %v157_v16 = vadd.f32 %v569_v36, %v156_v15 }
  0xb6   :  { %v129_v0 = vpop.f32.mrf.mxu0 }
  0xb7   :  { %v130_v1 = vadd.f32 %v569_v36, %v129_v0  ;;  %vm174_vm11 = vcmp.gt.f32.partialorder %v157_v16, 0.0  ;;  %v190_v19 = vmul.f32 0.01, %v157_v16 }
  0xb9   :  { %vm165_vm7 = vcmp.gt.f32.partialorder %v130_v1, 0.0  ;;  %v181_v3 = vmul.f32 0.01, %v130_v1  ;;  %v206_v21 = vsel %vm174_vm11, %v157_v16, %v190_v19 }
  0xba   :  { %286 = vmatmul.f32.gmra.mxu3 %v206_v21 }
  0xbb   :  { %v197_v4 = vsel %vm165_vm7, %v130_v1, %v181_v3 }
  0xbc   :  { %259 = vmatmul.f32.gmra.mxu1 %v197_v4 }
  0xbe   :  { %v132_v5 = vpop.f32.mrf.mxu0 }
  0xbf   :  { %v133_v6 = vadd.f32 %v569_v36, %v132_v5 }
  0xc1   :  { %vm166_vm8 = vcmp.gt.f32.partialorder %v133_v6, 0.0  ;;  %v182_v9 = vmul.f32 0.01, %v133_v6 }
  0xc3   :  { %v198_v11 = vsel %vm166_vm8, %v133_v6, %v182_v9 }
  0xc4   :  { %262 = vmatmul.f32.vlgmr.msra.gmra.mxu2 %v198_v11 }
  0xc6   :  { %v135_v13 = vpop.f32.mrf.mxu0 }
  0xc7   :  { %v136_v14 = vadd.f32 %v569_v36, %v135_v13 }
  0xc9   :  { %vm167_vm10 = vcmp.gt.f32.partialorder %v136_v14, 0.0  ;;  %v183_v17 = vmul.f32 0.01, %v136_v14 }
  0xcb   :  { %v199_v18 = vsel %vm167_vm10, %v136_v14, %v183_v17 }
  0xcc   :  { %265 = vmatmul.f32.gmra.mxu2 %v199_v18 }
  0xce   :  { %v138_v20 = vpop.f32.mrf.mxu0 }
  0xcf   :  { %v139_v22 = vadd.f32 %v569_v36, %v138_v20 }
  0xd1   :  { %vm168_vm12 = vcmp.gt.f32.partialorder %v139_v22, 0.0  ;;  %v184_v23 = vmul.f32 0.01, %v139_v22 }
  0xd3   :  { %v200_v25 = vsel %vm168_vm12, %v139_v22, %v184_v23 }
  0xd4   :  { %268 = vmatmul.f32.gmra.mxu2 %v200_v25 }
  0xdc   :  { %271 = vmatmul.f32.gmra.mxu2 %v201_v28 }
  0xe4   :  { %274 = vmatmul.f32.gmra.mxu2 %v202_v31 }
  0xec   :  { %277 = vmatmul.f32.gmra.mxu2 %v203_v34 }
  0xf4   :  { %280 = vmatmul.f32.gmra.mxu2 %v204_v37 }
 0x109   :  { %v242_v39 = vpop.f32.mrf.mxu1 }
 0x10a   :  { %v243_v40 = vadd.f32 %v242_v39, %v590_v38 }
 0x10c   :  { %vm290_vm1 = vcmp.gt.f32.partialorder %v243_v40, 0.0  ;;  %v306_v41 = vmul.f32 0.01, %v243_v40 }
 0x10e   :  { %v322_v42 = vsel %vm290_vm1, %v243_v40, %v306_v41 }
 0x10f   :  { %339 = vst.msk [vmem:[%s677_s5] sm:$0xff] %vm338_vm2, %v322_v42 }
 0x111   :  { %v245_v36 = vpop.f32.mrf.mxu1 }
 0x112   :  { %v246_v43 = vadd.f32 %v245_v36, %v590_v38 }
 0x114   :  { %vm291_vm3 = vcmp.gt.f32.partialorder %v246_v43, 0.0  ;;  %v307_v44 = vmul.f32 0.01, %v246_v43 }
 0x116   :  { %v323_v45 = vsel %vm291_vm3, %v246_v43, %v307_v44 }
 0x117   :  { %340 = vst.msk [vmem:[%s677_s5 + $0x8] sm:$0xff] %vm338_vm2, %v323_v45 }
 0x119   :  { %v248_v46 = vpop.f32.mrf.mxu1 }
 0x11a   :  { %v249_v47 = vadd.f32 %v248_v46, %v590_v38 }
 0x11c   :  { %vm292_vm4 = vcmp.gt.f32.partialorder %v249_v47, 0.0  ;;  %v308_v48 = vmul.f32 0.01, %v249_v47 }
 0x11e   :  { %v324_v49 = vsel %vm292_vm4, %v249_v47, %v308_v48 }
 0x11f   :  { %341 = vst.msk [vmem:[%s677_s5 + $0x10] sm:$0xff] %vm338_vm2, %v324_v49 }
 0x121   :  { %v251_v50 = vpop.f32.mrf.mxu1 }
 0x122   :  { %v252_v51 = vadd.f32 %v251_v50, %v590_v38 }
 0x124   :  { %vm293_vm5 = vcmp.gt.f32.partialorder %v252_v51, 0.0  ;;  %v309_v52 = vmul.f32 0.01, %v252_v51 }
 0x126   :  { %v325_v53 = vsel %vm293_vm5, %v252_v51, %v309_v52 }
 0x127   :  { %342 = vst.msk [vmem:[%s677_s5 + $0x18] sm:$0xff] %vm338_vm2, %v325_v53 }
 0x129   :  { %v254_v54 = vpop.f32.mrf.mxu1 }
 0x12a   :  { %v255_v55 = vadd.f32 %v254_v54, %v590_v38 }
 0x12c   :  { %vm294_vm6 = vcmp.gt.f32.partialorder %v255_v55, 0.0  ;;  %v310_v56 = vmul.f32 0.01, %v255_v55 }
 0x12e   :  { %v326_v57 = vsel %vm294_vm6, %v255_v55, %v310_v56 }
 0x12f   :  { %343 = vst.msk [vmem:[%s677_s5 + $0x20] sm:$0xff] %vm338_vm2, %v326_v57 }
 0x131   :  { %v257_v58 = vpop.f32.mrf.mxu1 }
 0x132   :  { %v258_v59 = vadd.f32 %v257_v58, %v590_v38 }
 0x134   :  { %vm295_vm7 = vcmp.gt.f32.partialorder %v258_v59, 0.0  ;;  %v311_v60 = vmul.f32 0.01, %v258_v59 }
 0x135   :  { %v284_v5 = vpop.f32.mrf.mxu3 }
 0x136   :  { %v327_v61 = vsel %vm295_vm7, %v258_v59, %v311_v60  ;;  %v285_v7 = vadd.f32 %v284_v5, %v590_v38 }
 0x137   :  { %344 = vst.msk [vmem:[%s677_s5 + $0x28] sm:$0xff] %vm338_vm2, %v327_v61 }
 0x138   :  { %vm304_vm10 = vcmp.gt.f32.partialorder %v285_v7, 0.0  ;;  %v320_v8 = vmul.f32 0.01, %v285_v7 }
 0x139   :  { %v260_v62 = vpop.f32.mrf.mxu1 }
 0x13a   :  { %v261_v63 = vadd.f32 %v260_v62, %v590_v38  ;;  %v336_v11 = vsel %vm304_vm10, %v285_v7, %v320_v8 }
 0x13b   :  { %353 = vst.msk [vmem:[%s677_s5 + $0x70] sm:$0xff] %vm338_vm2, %v336_v11 }
 0x13c   :  { %vm296_vm8 = vcmp.gt.f32.partialorder %v261_v63, 0.0  ;;  %v312_v0 = vmul.f32 0.01, %v261_v63 }
 0x13d   :  { %v287_v13 = vpop.f32.mrf.mxu3 }
 0x13e   :  { %v328_v1 = vsel %vm296_vm8, %v261_v63, %v312_v0  ;;  %v288_v15 = vadd.f32 %v287_v13, %v590_v38 }
 0x13f   :  { %345 = vst.msk [vmem:[%s677_s5 + $0x30] sm:$0xff] %vm338_vm2, %v328_v1 }
 0x140   :  { %vm305_vm12 = vcmp.gt.f32.partialorder %v288_v15, 0.0  ;;  %v321_v16 = vmul.f32 0.01, %v288_v15 }
 0x142   :  { %v337_v19 = vsel %vm305_vm12, %v288_v15, %v321_v16 }
 0x143   :  { %354 = vst.msk [vmem:[%s677_s5 + $0x78] sm:$0xff] %vm338_vm2, %v337_v19 }
 0x147   :  { %v263_v2 = vpop.f32.mrf.mxu2 }
 0x148   :  { %v264_v3 = vadd.f32 %v263_v2, %v590_v38 }
 0x14a   :  { %vm297_vm9 = vcmp.gt.f32.partialorder %v264_v3, 0.0  ;;  %v313_v4 = vmul.f32 0.01, %v264_v3 }
 0x14c   :  { %v329_v6 = vsel %vm297_vm9, %v264_v3, %v313_v4 }
 0x14d   :  { %346 = vst.msk [vmem:[%s677_s5 + $0x38] sm:$0xff] %vm338_vm2, %v329_v6 }
 0x14f   :  { %v266_v9 = vpop.f32.mrf.mxu2 }
 0x150   :  { %v267_v10 = vadd.f32 %v266_v9, %v590_v38 }
 0x152   :  { %vm298_vm11 = vcmp.gt.f32.partialorder %v267_v10, 0.0  ;;  %v314_v12 = vmul.f32 0.01, %v267_v10 }
 0x154   :  { %v330_v14 = vsel %vm298_vm11, %v267_v10, %v314_v12 }
 0x155   :  { %347 = vst.msk [vmem:[%s677_s5 + $0x40] sm:$0xff] %vm338_vm2, %v330_v14 }
 0x157   :  { %v269_v17 = vpop.f32.mrf.mxu2 }
 0x158   :  { %v270_v18 = vadd.f32 %v269_v17, %v590_v38 }
 0x15a   :  { %vm299_vm13 = vcmp.gt.f32.partialorder %v270_v18, 0.0  ;;  %v315_v20 = vmul.f32 0.01, %v270_v18 }
 0x15c   :  { %v331_v21 = vsel %vm299_vm13, %v270_v18, %v315_v20 }
 0x15d   :  { %348 = vst.msk [vmem:[%s677_s5 + $0x48] sm:$0xff] %vm338_vm2, %v331_v21 }
 0x15f   :  { %v272_v22 = vpop.f32.mrf.mxu2 }
 0x160   :  { %v273_v23 = vadd.f32 %v272_v22, %v590_v38 }
 0x162   :  { %vm300_vm14 = vcmp.gt.f32.partialorder %v273_v23, 0.0  ;;  %v316_v24 = vmul.f32 0.01, %v273_v23 }
 0x164   :  { %v332_v25 = vsel %vm300_vm14, %v273_v23, %v316_v24 }
 0x165   :  { %349 = vst.msk [vmem:[%s677_s5 + $0x50] sm:$0xff] %vm338_vm2, %v332_v25 }
 0x167   :  { %v275_v26 = vpop.f32.mrf.mxu2 }
 0x168   :  { %v276_v27 = vadd.f32 %v275_v26, %v590_v38 }
 0x16a   :  { %vm301_vm15 = vcmp.gt.f32.partialorder %v276_v27, 0.0  ;;  %v317_v28 = vmul.f32 0.01, %v276_v27 }
 0x16c   :  { %v333_v29 = vsel %vm301_vm15, %v276_v27, %v317_v28 }
 0x16d   :  { %350 = vst.msk [vmem:[%s677_s5 + $0x58] sm:$0xff] %vm338_vm2, %v333_v29 }
 0x16f   :  { %v278_v30 = vpop.f32.mrf.mxu2 }
 0x170   :  { %v279_v31 = vadd.f32 %v278_v30, %v590_v38 }
 0x172   :  { %vm302_vm0 = vcmp.gt.f32.partialorder %v279_v31, 0.0  ;;  %v318_v32 = vmul.f32 0.01, %v279_v31 }
 0x174   :  { %v334_v33 = vsel %vm302_vm0, %v279_v31, %v318_v32 }
 0x175   :  { %351 = vst.msk [vmem:[%s677_s5 + $0x60] sm:$0xff] %vm338_vm2, %v334_v33 }
 0x177   :  { %v281_v34 = vpop.f32.mrf.mxu2 }
 0x178   :  { %v282_v35 = vadd.f32 %v281_v34, %v590_v38 }
 0x17a   :  { %vm303_vm1 = vcmp.gt.f32.partialorder %v282_v35, 0.0  ;;  %v319_v37 = vmul.f32 0.01, %v282_v35 }
 0x17c   :  { %v335_v39 = vsel %vm303_vm1, %v282_v35, %v319_v37 }
 0x17d   :  { %352 = vst.msk [vmem:[%s677_s5 + $0x68] sm:$0xff] %vm338_vm2, %v335_v39 }

</bundles_post_ra>
